<compile_context>
chip_gen: v5e
topology: v5e:2x2
jax: 0.10.0
libtpu: 0.0.40
codegen_flags: <defaults>
</compile_context>

<pallas_src>
import functools

import jax
import jax.numpy as jnp
from jax import lax
from jax.experimental import pallas as pl
from jax.experimental.pallas import tpu as pltpu

_LANES = 128
_SUBLANES = 8


def _round_up(x, m):
    return ((x + m - 1) // m) * m


def _chip_defaults():
    """(num_splits, max_tile_rows, vmem_limit_bytes) for the local TPU."""
    kind = ""
    try:
        kind = jax.devices()[0].device_kind.lower()
    except Exception:
        pass
    if "v7" in kind:
        # 2 TensorCores; 4096-row f32 tiles -> 4 inputs x 2 bufs x 2 MiB = 16 MiB IO.
        # TODO(synk): if an xprof trace shows only one TC busy, switch the leading
        # grid axis to pltpu.CORE_PARALLEL.
        return 2, 4096, 48 * 1024 * 1024
    if "v6" in kind:
        # Single TC, 128 MiB VMEM -> big tiles amortize the ~0.35us/step overhead.
        return 1, 8192, 64 * 1024 * 1024
    # v5e / unknown: conservative tiles, but explicit vmem limit (> default 16 MiB).
    return 1, 2048, 32 * 1024 * 1024


def _mse_partial_kernel(pcd_ref, text_ref, image_ref, sketch_ref, out_ref, *,
                        tiles_per_split, tile_rows, stripe_rows, valid_rows,
                        needs_mask):
    """Accumulates sum((s-t)^2 + (s-p)^2 + (s-i)^2) over row tiles.

    out_ref is an (8, 128) f32 partial-sum block resident across the inner
    ("arbitrary") grid axis; one block per outer ("parallel") split.
    """
    split = pl.program_id(0)
    step = pl.program_id(1)

    @pl.when(step == 0)
    def _init():
        out_ref[...] = jnp.zeros_like(out_ref)

    tile_start = (split * tiles_per_split + step) * tile_rows

    def stripe_sum(row0, nrows):
        rs = pl.ds(row0, nrows)
        skh = sketch_ref[rs, :].astype(jnp.float32)
        d_t = skh - text_ref[rs, :].astype(jnp.float32)
        d_p = skh - pcd_ref[rs, :].astype(jnp.float32)
        d_i = skh - image_ref[rs, :].astype(jnp.float32)
        # Single fused elementwise pass (VPU); defer cross-lane reduction.
        sq = d_t * d_t + d_p * d_p + d_i * d_i
        if needs_mask:
            # Rows past the real array extent come from a partial (OOB) DMA block
            # and hold garbage -> select them out before accumulating.
            row_idx = (tile_start + row0
                       + lax.broadcasted_iota(jnp.int32, (nrows, _LANES), 0))
            sq = jnp.where(row_idx < valid_rows, sq, 0.0)
        # Fold (nrows, 128) -> (8, 128) with sublane-aligned VPU adds only.
        return jnp.sum(sq.reshape(-1, _SUBLANES, _LANES), axis=0)

    n_full = tile_rows // stripe_rows
    rem = tile_rows - n_full * stripe_rows  # static, multiple of the sublane unit

    def body(s, acc):
        row0 = pl.multiple_of(s * stripe_rows, stripe_rows)
        return acc + stripe_sum(row0, stripe_rows)

    acc = lax.fori_loop(0, n_full, body,
                        jnp.zeros((_SUBLANES, _LANES), jnp.float32),
                        unroll=True)
    if rem:
        acc = acc + stripe_sum(n_full * stripe_rows, rem)
    out_ref[...] += acc


def mse_loss_pallas(pcd_embed, text_embed, image_embed, sketch_embed,
                    logit_scale=None, *, max_tile_rows=None, num_splits=None):
    """Pallas equivalent of MSELoss.forward: mse(s,t) + mse(s,p) + mse(s,i).

    logit_scale is accepted and unused, matching the PyTorch module.
    """
    shapes = {tuple(a.shape) for a in (pcd_embed, text_embed, image_embed, sketch_embed)}
    assert len(shapes) == 1, f"all embeddings must share one shape, got {shapes}"
    n = sketch_embed.size
    assert n > 0

    d_splits, d_tile, vmem_limit = _chip_defaults()
    if num_splits is None:
        num_splits = d_splits
    if max_tile_rows is None:
        max_tile_rows = d_tile

    # Sublane packing unit of the narrowest input dtype: f32->8, bf16->16, int8->32.
    min_itemsize = min(jnp.dtype(a.dtype).itemsize
                       for a in (pcd_embed, text_embed, image_embed, sketch_embed))
    sub = max(_SUBLANES, 32 // int(min_itemsize))

    # ---- lane-dense layout: flatten to (total_rows, 128) ----
    # Padding only triggers when n is not already a multiple of sub*128 (pure
    # reshape otherwise => no extra HBM traffic). Grid over-coverage beyond
    # total_rows is handled by in-kernel masking, not by padding.
    total_rows = _round_up(pl.cdiv(n, _LANES), sub)
    padded_n = total_rows * _LANES

    max_tile_rows = max(sub, (max_tile_rows // sub) * sub)
    if total_rows < 4096:
        num_splits = 1  # splitting tiny inputs across cores buys nothing

    rows_per_split = _round_up(pl.cdiv(total_rows, num_splits), sub)
    tiles_per_split = pl.cdiv(rows_per_split, max_tile_rows)
    # Balanced tiles: waste is < 1 sublane row per split (vs. an almost-empty tail tile).
    tile_rows = _round_up(pl.cdiv(rows_per_split, tiles_per_split), sub)
    stripe_rows = min(512, tile_rows)  # bounds elementwise intermediates in VMEM
    coverage = num_splits * tiles_per_split * tile_rows
    needs_mask = coverage != total_rows

    def _prep(x):
        flat = x.reshape(-1)
        if flat.shape[0] != padded_n:
            # Zero padding on all four arrays -> (s - x) = 0 there, no bias.
            flat = jnp.pad(flat, (0, padded_n - flat.shape[0]))
        return flat.reshape(total_rows, _LANES)

    inputs = [_prep(a) for a in (pcd_embed, text_embed, image_embed, sketch_embed)]

    in_spec = pl.BlockSpec((tile_rows, _LANES),
                           lambda c, i: (c * tiles_per_split + i, 0))
    out_spec = pl.BlockSpec((_SUBLANES, _LANES), lambda c, i: (c, 0))

    kernel = functools.partial(
        _mse_partial_kernel,
        tiles_per_split=tiles_per_split, tile_rows=tile_rows,
        stripe_rows=stripe_rows, valid_rows=total_rows, needs_mask=needs_mask)

    bytes_accessed = sum(int(a.size) * jnp.dtype(a.dtype).itemsize
                         for a in (pcd_embed, text_embed, image_embed, sketch_embed))
    cost = pl.CostEstimate(flops=8 * n, transcendentals=0,
                           bytes_accessed=int(bytes_accessed))

    partials = pl.pallas_call(
        kernel,
        out_shape=jax.ShapeDtypeStruct((num_splits * _SUBLANES, _LANES), jnp.float32),
        grid=(num_splits, tiles_per_split),
        in_specs=[in_spec] * 4,
        out_specs=out_spec,
        compiler_params=pltpu.CompilerParams(
            dimension_semantics=("parallel", "arbitrary"),
            vmem_limit_bytes=vmem_limit),
        cost_estimate=cost,
    )(*inputs)

    # Tiny one-time finalize: sum the per-split (8,128) partials and scale by 1/n
    # (sum1/n + sum2/n + sum3/n == (sum1+sum2+sum3)/n).
    loss = jnp.sum(partials) * jnp.float32(1.0 / n)
    return {"loss": loss}


if __name__ == "__main__":
    key = jax.random.PRNGKey(0)
    k_pcd, k_txt, k_img, k_skh = jax.random.split(key, 4)

    B, D = 8, 32  # small embedding batch / hidden dims
    pcd_embed = jax.random.normal(k_pcd, (B, D), dtype=jnp.float32)
    text_embed = jax.random.normal(k_txt, (B, D), dtype=jnp.float32)
    image_embed = jax.random.normal(k_img, (B, D), dtype=jnp.float32)
    sketch_embed = jax.random.normal(k_skh, (B, D), dtype=jnp.float32)
    logit_scale = jnp.float32(100.0)  # unused, mirrors the PyTorch signature

    def ref_loss(p, t, i, s):
        return (jnp.mean((s - t) ** 2)
                + jnp.mean((s - p) ** 2)
                + jnp.mean((s - i) ** 2))

    result = mse_loss_pallas(pcd_embed, text_embed, image_embed, sketch_embed, logit_scale)
    loss = jax.block_until_ready(result["loss"])
    ref = ref_loss(pcd_embed, text_embed, image_embed, sketch_embed)
    assert jnp.allclose(loss, ref, rtol=1e-5, atol=1e-5), (loss, ref)

    # Second check: non-multiple-of-128 size (pad fallback) + small non-dividing
    # tiles to exercise multi-step accumulation and the in-kernel masking path.
    k1, k2, k3, k4 = jax.random.split(jax.random.PRNGKey(1), 4)
    B2, D2 = 32, 300
    p2 = jax.random.normal(k1, (B2, D2), dtype=jnp.float32)
    t2 = jax.random.normal(k2, (B2, D2), dtype=jnp.float32)
    i2 = jax.random.normal(k3, (B2, D2), dtype=jnp.float32)
    s2 = jax.random.normal(k4, (B2, D2), dtype=jnp.float32)
    loss2 = jax.block_until_ready(
        mse_loss_pallas(p2, t2, i2, s2, logit_scale, max_tile_rows=24)["loss"])
    ref2 = ref_loss(p2, t2, i2, s2)
    assert jnp.allclose(loss2, ref2, rtol=1e-5, atol=1e-5), (loss2, ref2)

    print("KERNEL_OK")
</pallas_src>

<mosaic_0001>
module attributes {stable_mosaic.version = 11 : i64} {
  func.func @_mse_partial_kernel(%arg0: i32, %arg1: i32, %arg2: memref<8x128xf32, #tpu.memory_space<vmem>>, %arg3: memref<8x128xf32, #tpu.memory_space<vmem>>, %arg4: memref<8x128xf32, #tpu.memory_space<vmem>>, %arg5: memref<8x128xf32, #tpu.memory_space<vmem>>, %arg6: memref<8x128xf32, #tpu.memory_space<vmem>>) attributes {dimension_semantics = [#tpu.dimension_semantics<parallel>, #tpu.dimension_semantics<arbitrary>], iteration_bounds = array<i64: 1, 1>, scalar_prefetch = 0 : i64, scratch_operands = 0 : i64, tpu.core_type = #tpu.core_type<tc>, window_params = [{transform_indices = @transform_0, window_bounds = array<i64: 8, 128>}, {transform_indices = @transform_1, window_bounds = array<i64: 8, 128>}, {transform_indices = @transform_2, window_bounds = array<i64: 8, 128>}, {transform_indices = @transform_3, window_bounds = array<i64: 8, 128>}, {transform_indices = @transform_4, window_bounds = array<i64: 8, 128>}]} {
    %c0_i32 = arith.constant 0 : i32
    %0 = arith.cmpi eq, %arg1, %c0_i32 : i32
    %1 = arith.extui %0 : i1 to i32
    %c0_i32_0 = arith.constant 0 : i32
    %2 = arith.cmpi ne, %1, %c0_i32_0 : i32
    scf.if %2 {
      %cst_10 = arith.constant 0.000000e+00 : f32
      %28 = vector.broadcast %cst_10 : f32 to vector<8x128xf32>
      %c0_11 = arith.constant 0 : index
      %c0_12 = arith.constant 0 : index
      %29 = vector.load %arg6[%c0_11, %c0_12] : memref<8x128xf32, #tpu.memory_space<vmem>>, vector<8x128xf32>
      tpu.vector_store %arg6[%c0_11, %c0_12], %28 {strides = array<i32>} : memref<8x128xf32, #tpu.memory_space<vmem>>, vector<8x128xf32>,
    } else {
    }
    %cst = arith.constant 0.000000e+00 : f32
    %3 = vector.broadcast %cst : f32 to vector<8x128xf32>
    %c0_i32_1 = arith.constant 0 : i32
    %c8_i32 = arith.constant 8 : i32
    %4 = arith.muli %c0_i32_1, %c8_i32 : i32
    %5 = tpu.assume_multiple %4, 8 : i32
    %6 = arith.index_cast %5 : i32 to index
    %c0 = arith.constant 0 : index
    %7 = vector.load %arg5[%6, %c0] : memref<8x128xf32, #tpu.memory_space<vmem>>, vector<8x128xf32>
    %8 = arith.index_cast %5 : i32 to index
    %c0_2 = arith.constant 0 : index
    %9 = vector.load %arg3[%8, %c0_2] : memref<8x128xf32, #tpu.memory_space<vmem>>, vector<8x128xf32>
    %10 = arith.subf %7, %9 : vector<8x128xf32>
    %11 = arith.index_cast %5 : i32 to index
    %c0_3 = arith.constant 0 : index
    %12 = vector.load %arg2[%11, %c0_3] : memref<8x128xf32, #tpu.memory_space<vmem>>, vector<8x128xf32>
    %13 = arith.subf %7, %12 : vector<8x128xf32>
    %14 = arith.index_cast %5 : i32 to index
    %c0_4 = arith.constant 0 : index
    %15 = vector.load %arg4[%14, %c0_4] : memref<8x128xf32, #tpu.memory_space<vmem>>, vector<8x128xf32>
    %16 = arith.subf %7, %15 : vector<8x128xf32>
    %17 = arith.mulf %10, %10 : vector<8x128xf32>
    %18 = arith.mulf %13, %13 : vector<8x128xf32>
    %19 = arith.addf %17, %18 : vector<8x128xf32>
    %20 = arith.mulf %16, %16 : vector<8x128xf32>
    %21 = arith.addf %19, %20 : vector<8x128xf32>
    %22 = vector.shape_cast %21 : vector<8x128xf32> to vector<1x8x128xf32>
    %cst_5 = arith.constant dense<0.000000e+00> : vector<8x128xf32>
    %23 = vector.multi_reduction <add>, %22, %cst_5 [0] : vector<1x8x128xf32> to vector<8x128xf32>
    %24 = arith.addf %3, %23 : vector<8x128xf32>
    %c1_i32 = arith.constant 1 : i32
    %c0_6 = arith.constant 0 : index
    %c0_7 = arith.constant 0 : index
    %25 = vector.load %arg6[%c0_6, %c0_7] : memref<8x128xf32, #tpu.memory_space<vmem>>, vector<8x128xf32>
    %26 = arith.addf %25, %24 : vector<8x128xf32>
    %c0_8 = arith.constant 0 : index
    %c0_9 = arith.constant 0 : index
    %27 = vector.load %arg6[%c0_8, %c0_9] : memref<8x128xf32, #tpu.memory_space<vmem>>, vector<8x128xf32>
    tpu.vector_store %arg6[%c0_8, %c0_9], %26 {strides = array<i32>} : memref<8x128xf32, #tpu.memory_space<vmem>>, vector<8x128xf32>,
    return
  }
  func.func @transform_0(%arg0: i32, %arg1: i32) -> (i32, i32) {
    %c1_i32 = arith.constant 1 : i32
    %0 = arith.muli %arg0, %c1_i32 : i32
    %1 = arith.addi %0, %arg1 : i32
    %c0_i32 = arith.constant 0 : i32
    %c0_i32_0 = arith.constant 0 : i32
    return %1, %c0_i32 : i32, i32
  }
  func.func @transform_1(%arg0: i32, %arg1: i32) -> (i32, i32) {
    %c1_i32 = arith.constant 1 : i32
    %0 = arith.muli %arg0, %c1_i32 : i32
    %1 = arith.addi %0, %arg1 : i32
    %c0_i32 = arith.constant 0 : i32
    %c0_i32_0 = arith.constant 0 : i32
    return %1, %c0_i32 : i32, i32
  }
  func.func @transform_2(%arg0: i32, %arg1: i32) -> (i32, i32) {
    %c1_i32 = arith.constant 1 : i32
    %0 = arith.muli %arg0, %c1_i32 : i32
    %1 = arith.addi %0, %arg1 : i32
    %c0_i32 = arith.constant 0 : i32
    %c0_i32_0 = arith.constant 0 : i32
    return %1, %c0_i32 : i32, i32
  }
  func.func @transform_3(%arg0: i32, %arg1: i32) -> (i32, i32) {
    %c1_i32 = arith.constant 1 : i32
    %0 = arith.muli %arg0, %c1_i32 : i32
    %1 = arith.addi %0, %arg1 : i32
    %c0_i32 = arith.constant 0 : i32
    %c0_i32_0 = arith.constant 0 : i32
    return %1, %c0_i32 : i32, i32
  }
  func.func @transform_4(%arg0: i32, %arg1: i32) -> (i32, i32) {
    %c0_i32 = arith.constant 0 : i32
    %c0_i32_0 = arith.constant 0 : i32
    return %arg0, %c0_i32 : i32, i32
  }
}

</mosaic_0001>

<bundles_post_ra>
// kernel: tpu_custom_call.1
= control target key start
LH: loop header
LB: loop body
LE: loop exit
PB: predicated region body
PF: predicated region fallthrough
CT: control target
= control target key end

     0   :  { %9 = vsyncpa [#allocation3], 0  ;;  %s309_s0 = inlined_call_operand.hbm [shape: f32[8,128], index: 0, kind: input, shape index: {}]   ;;  %s310_s1 = inlined_call_operand.hbm [shape: f32[8,128], index: 1, kind: input, shape index: {}]   ;;  %s311_s2 = inlined_call_operand.hbm [shape: f32[8,128], index: 2, kind: input, shape index: {}]   ;;  %s312_s3 = inlined_call_operand.hbm [shape: f32[8,128], index: 3, kind: input, shape index: {}]   ;;  %s313_s4 = inlined_call_operand.hbm [shape: f32[8,128], index: 4, kind: output, shape index: {}]  }
   0x1   :  { %10 = vsyncpa [#allocation6], 0 }
   0x2   :  { %11 = vsyncpa [#allocation9], 0  ;;  %s35_s17 = sshll.u32 %s310_s1, 4  ;;  %s36_s17 = int_to_ptr.hbm [resolvable:$true] %s35_s17 }
   0x3   :  { %12 = vsyncpa [#allocation4], 0  ;;  %s264_s18 = smov [#allocation5]   ;;  %s21_s22 = sshll.u32 %s309_s0, 4  ;;  %s22_s22 = int_to_ptr.hbm [resolvable:$true] %s21_s22 }
   0x4   :  { %s37_s19 = sshll.u32 %s264_s18, 4  ;;  %s265_s23 = smov [#allocation2]   ;;  %s38_s19 = int_to_ptr.vmem [resolvable:$true] %s37_s19 }
   0x5   :  { %40 = dma.hbm_to_vmem [thread:$0]  %s36_s17, 128, %s38_s19, [#allocation6]  }
   0x6   :  { %s23_s24 = sshll.u32 %s265_s23, 4  ;;  %s49_s27 = sshll.u32 %s311_s2, 4  ;;  %s24_s24 = int_to_ptr.vmem [resolvable:$true] %s23_s24  ;;  %s50_s27 = int_to_ptr.hbm [resolvable:$true] %s49_s27 }
   0x7   :  { %26 = dma.hbm_to_vmem [thread:$0]  %s22_s22, 128, %s24_s24, [#allocation3]  }
   0x8   :  { %s63_s29 = sshll.u32 %s312_s3, 4  ;;  %s266_s30 = smov [#allocation7]   ;;  %s64_s29 = int_to_ptr.hbm [resolvable:$true] %s63_s29 }
   0x9   :  { %s51_s5 = sshll.u32 %s266_s30, 4  ;;  %s267_s0 = smov [#allocation8]   ;;  %s52_s5 = int_to_ptr.vmem [resolvable:$true] %s51_s5 }
   0xa   :  { %54 = dma.hbm_to_vmem [thread:$0]  %s50_s27, 128, %s52_s5, [#allocation6]  }
   0xb   :  { %s65_s6 = sshll.u32 %s267_s0, 4  ;;  %s66_s6 = int_to_ptr.vmem [resolvable:$true] %s65_s6 }
   0xc   :  { %68 = dma.hbm_to_vmem [thread:$0]  %s64_s29, 128, %s66_s6, [#allocation9]  }
   0xd   :  { %256 = dma.done.wait [#allocation3], 128  }
   0xe   :  { %257 = vsyncadd [#allocation3], 4294967168 }
   0xf   :  { %258 = dma.done.wait [#allocation6], 256  }
  0x10   :  { %259 = vsyncadd [#allocation6], 4294967040 }
  0x11   :  { %260 = dma.done.wait [#allocation9], 128  }
  0x12   :  { %261 = vsyncadd [#allocation9], 4294967168  ;;  %v94_v0 = vld [vmem:[#allocation8] sm:$0xff]  ;;  %v95_v1 = vld [vmem:[#allocation5] sm:$0xff]  ;;  %s268_s2 = smov [#allocation10]   ;;  %s118_s9 = sshll.u32 %s313_s4, 4  ;;  %s119_s9 = int_to_ptr.hbm [resolvable:$true] %s118_s9 }
  0x13   :  { %v97_v2 = vld [vmem:[#allocation2] sm:$0xff]  ;;  %v96_v3 = vsub.f32 %v94_v0, %v95_v1  ;;  %v99_v5 = vld [vmem:[#allocation7] sm:$0xff]  ;;  %s116_s3 = sshll.u32 %s268_s2, 4  ;;  %s117_s3 = int_to_ptr.vmem [resolvable:$true] %s116_s3 }
  0x14   :  { %v98_v4 = vsub.f32 %v94_v0, %v97_v2  ;;  %v100_v6 = vsub.f32 %v94_v0, %v99_v5 }
  0x15   :  { %v101_v7 = vmul.f32 %v96_v3, %v96_v3 }
  0x16   :  { %v102_v8 = vmul.f32 %v98_v4, %v98_v4  ;;  %v104_v9 = vmul.f32 %v100_v6, %v100_v6 }
  0x18   :  { %v103_v10 = vadd.f32 %v102_v8, %v101_v7 }
  0x1a   :  { %v105_v11 = vadd.f32 %v104_v9, %v103_v10 }
  0x1c   :  { %110 = vst [vmem:[#allocation10] sm:$0xff] %v105_v11 }
  0x1d   :  { %121 = dma.vmem_to_hbm [thread:$0]  %s117_s3, 128, %s119_s9, [#allocation4]  }
  0x1e   :  { %262 = dma.done.wait [#allocation4], 128  }
  0x1f   :  { %263 = vsyncadd [#allocation4], 4294967168 }
  0x20   :  { %126 = vsyncpa [#allocation3], 1 }
  0x21   :  { %127 = vsyncpa [#allocation6], 1 }
  0x22   :  { %128 = vsyncpa [#allocation9], 1 }
  0x23   :  { %129 = vsyncpa [#allocation4], 1 }

</bundles_post_ra>
